<compile_context>
chip_gen: v7x
topology: tpu7x:2x2x1
jax: 0.10.0
libtpu: 0.0.40
codegen_flags: <defaults>
</compile_context>

<pallas_src>
import numpy as np
import jax
import jax.numpy as jnp
from jax.experimental import pallas as pl
from jax.experimental.pallas import tpu as pltpu

# ---- module-consistent hyperparameters ----
NUM_NODES = 16            # data.m
RNN_UNITS = 32            # args.n_hidden
INPUT_DIM = 1             # EncoderModel.input_dim
MAX_DIFFUSION_STEP = 2
NUM_RNN_LAYERS = 1
BATCH = 2
SEQ_LEN = 8               # args.window (used by the fused sequence kernel)
NUM_MATRICES = MAX_DIFFUSION_STEP + 1          # T0, T1, T2
HIDDEN_STATE_SIZE = NUM_NODES * RNN_UNITS
IN_RAW = INPUT_DIM + RNN_UNITS                 # 33 : per-node concat(inputs, state)
IN_EXT = IN_RAW + 1                            # 34 : [x | h | 1] (ones column = bias)


# -------------------- shared in-kernel cell math --------------------
def _dcgru_cell_math(x0, h, lb, lb2, w_ref):
    """One DCGRU cell update over the batch-folded node axis.

    x0   : (B*N, 1)    f32  input column
    h    : (B*N, H)    f32  previous hidden state
    lb   : (B*N, B*N)  f32  kron(I_B, L)            (Chebyshev T1 operator)
    lb2  : (B*N, B*N)  f32  kron(I_B, 2*L@L - I)    (Chebyshev T2 operator)
    w_ref: (2, K, IN_EXT, 2H) f32  packed weights; w_ref[0] = r/u gate,
           w_ref[1] = candidate (columns H:2H are zero pad). Rows 0..32 of each
           (IN_EXT, 2H) slice are the [x | h] weights for that diffusion order,
           row 33 is the bias (nonzero for order 0 only).
    """
    hdim = h.shape[-1]
    ones = jnp.ones_like(x0)

    def gconv(state, gate):
        # Fold x and the bias-ones column into the state: the input's diffusion and
        # the bias add fall out of the same matmuls (no matvecs, no broadcasts).
        ext = jnp.concatenate([x0, state, ones], axis=-1)               # (B*N, IN_EXT)
        s1 = jnp.dot(lb, ext, preferred_element_type=jnp.float32)       # T1 [x|state]
        s2 = jnp.dot(lb2, ext, preferred_element_type=jnp.float32)      # T2, independent push
        # three accumulating per-order projections (no lane concat to 3*IN_EXT)
        acc = jnp.dot(ext, w_ref[gate, 0], preferred_element_type=jnp.float32)
        acc += jnp.dot(s1, w_ref[gate, 1], preferred_element_type=jnp.float32)
        acc += jnp.dot(s2, w_ref[gate, 2], preferred_element_type=jnp.float32)
        return acc                                                       # (B*N, 2H)

    pre_ru = gconv(h, 0)
    # sigmoid with the divide on the EUP slot
    ru = pl.reciprocal(1.0 + jnp.exp(-pre_ru), approx=True)
    r = ru[:, :hdim]
    u = ru[:, hdim:]
    c = jnp.tanh(gconv(r * h, 1)[:, :hdim])
    return c + u * (h - c)          # == u*h + (1-u)*c, one fewer VPU mul


# -------------------- single-step cell kernel (module forward) --------------------
def dcgru_cell_kernel(x_ref, h_ref, lap_ref, w_ref, out_ref):
    out_ref[...] = _dcgru_cell_math(x_ref[...], h_ref[...],
                                    lap_ref[0], lap_ref[1], w_ref)


def dcgru_cell(inputs_flat, hx_flat, lap2, w):
    """inputs_flat: (B, N*input_dim); hx_flat: (B, N*H) -> new state (B, N*H)."""
    B = inputs_flat.shape[0]
    x = inputs_flat.reshape(B * NUM_NODES, INPUT_DIM).astype(jnp.float32)
    h = hx_flat.reshape(B * NUM_NODES, RNN_UNITS).astype(jnp.float32)

    vmem = pl.BlockSpec(memory_space=pltpu.MemorySpace.VMEM)
    new_h = pl.pallas_call(
        dcgru_cell_kernel,
        out_shape=jax.ShapeDtypeStruct((B * NUM_NODES, RNN_UNITS), jnp.float32),
        in_specs=[vmem] * 4,
        out_specs=vmem,
    )(x, h, lap2, w)
    return new_h.reshape(B, HIDDEN_STATE_SIZE)


# -------------------- fused sequence kernel: T timesteps in one pallas_call -------
def dcgru_seq_kernel(x_ref, h0_ref, lap_ref, w_ref, hseq_ref, h_scratch):
    @pl.when(pl.program_id(0) == 0)
    def _():
        h_scratch[...] = h0_ref[...]
    h_new = _dcgru_cell_math(x_ref[0], h_scratch[...],
                             lap_ref[0], lap_ref[1], w_ref)
    h_scratch[...] = h_new
    hseq_ref[0] = h_new


def encoder_forward_sequence(inputs_seq, params, hidden_state=None):
    """Run EncoderModel.forward over a whole window inside ONE pallas_call.

    inputs_seq: (T, B, num_nodes * input_dim)
    returns:    (T, B, hidden_state_size) -- encoder output at every timestep
                (== looping encoder_forward and threading hidden_state).
    Weights / Laplacian operators use constant index_maps (DMA'd once); hidden
    state lives in a VMEM scratch; time axis is recurrent -> 'arbitrary'.
    """
    T, B, _ = inputs_seq.shape
    BN = B * NUM_NODES
    if hidden_state is None:
        hidden_state = jnp.zeros((NUM_RNN_LAYERS, B, HIDDEN_STATE_SIZE), jnp.float32)
    lap2 = _diffusion_operators(params, B)
    w = params["layers"][0]["w"]
    x = inputs_seq.reshape(T, BN, INPUT_DIM).astype(jnp.float32)
    h0 = hidden_state[0].reshape(BN, RNN_UNITS).astype(jnp.float32)

    hseq = pl.pallas_call(
        dcgru_seq_kernel,
        out_shape=jax.ShapeDtypeStruct((T, BN, RNN_UNITS), jnp.float32),
        grid_spec=pltpu.PrefetchScalarGridSpec(
            num_scalar_prefetch=0,
            grid=(T,),
            in_specs=[
                pl.BlockSpec((1, BN, INPUT_DIM), lambda t: (t, 0, 0)),
                pl.BlockSpec((BN, RNN_UNITS), lambda t: (0, 0)),
                pl.BlockSpec((2, BN, BN), lambda t: (0, 0, 0)),
                pl.BlockSpec((2, NUM_MATRICES, IN_EXT, 2 * RNN_UNITS),
                             lambda t: (0, 0, 0, 0)),
            ],
            out_specs=pl.BlockSpec((1, BN, RNN_UNITS), lambda t: (t, 0, 0)),
            scratch_shapes=[pltpu.VMEM((BN, RNN_UNITS), jnp.float32)],
        ),
        compiler_params=pltpu.CompilerParams(
            dimension_semantics=("arbitrary",)),    # recurrence: cannot parallelize T
    )(x, h0, lap2, w)
    return hseq.reshape(T, B, HIDDEN_STATE_SIZE)


@jax.jit
def encoder_forward_sequence_jit(inputs_seq, params):
    return encoder_forward_sequence(inputs_seq, params, hidden_state=None)


# -------------------- EncoderModel.forward (single timestep, module semantics) ----
def _diffusion_operators(params, B):
    """Stack [kron(I_B, L), kron(I_B, 2*L@L - I)] -> (2, B*N, B*N)."""
    # TODO(synk): for large batch, tile per-batch blocks instead of materializing
    # kron(I_B, L) -- it grows as (B*N)^2 (64 MiB at B=256, N=16 == all of v7x VMEM).
    L = params["lap"]
    L2 = 2.0 * (L @ L) - jnp.eye(NUM_NODES, dtype=jnp.float32)
    eye_b = jnp.eye(B, dtype=jnp.float32)
    return jnp.stack([jnp.kron(eye_b, L), jnp.kron(eye_b, L2)])


def encoder_forward(inputs, params, hidden_state=None):
    """
    inputs:       (B, num_nodes * input_dim)
    hidden_state: (num_rnn_layers, B, num_nodes * rnn_units) or None
    returns: (output (B, hidden_state_size), hidden_state (num_layers, B, hidden_state_size))
    """
    B = inputs.shape[0]
    if hidden_state is None:
        hidden_state = jnp.zeros((NUM_RNN_LAYERS, B, HIDDEN_STATE_SIZE), jnp.float32)
    lap2 = _diffusion_operators(params, B)
    hidden_states = []
    output = inputs
    # TODO(synk): layers beyond the first would need input_dim = rnn_units weights;
    # unused here since num_rnn_layers = 1 (matches the reference config).
    for layer_num in range(NUM_RNN_LAYERS):
        next_h = dcgru_cell(output, hidden_state[layer_num],
                            lap2, params["layers"][layer_num]["w"])
        hidden_states.append(next_h)
        output = next_h
    return output, jnp.stack(hidden_states)


@jax.jit
def encoder_forward_jit(inputs, params):
    return encoder_forward(inputs, params, hidden_state=None)


# -------------------- deterministic parameter / support setup ---------------------
def scaled_laplacian(adj):
    """Replicates utils.calculate_scaled_laplacian(adj, lambda_max=None), undirected."""
    adj = np.maximum(adj, adj.T)
    d = adj.sum(axis=1)
    d_inv_sqrt = np.where(d > 0, 1.0 / np.sqrt(np.maximum(d, 1e-12)), 0.0)
    l_norm = np.eye(adj.shape[0]) - d_inv_sqrt[:, None] * adj * d_inv_sqrt[None, :]
    lambda_max = float(np.linalg.eigvalsh(l_norm).max())
    return ((2.0 / lambda_max) * l_norm - np.eye(adj.shape[0])).astype(np.float32)


def init_params(key):
    k_adj, k_layers = jax.random.split(key)
    # deterministic synthetic adjacency (stands in for data.orig_adj); copy -> writable
    adj = np.array(jax.random.uniform(k_adj, (NUM_NODES, NUM_NODES), jnp.float32))
    np.fill_diagonal(adj, 0.0)
    lap = jnp.asarray(scaled_laplacian(adj))

    def xavier(k, shape, fan_in, fan_out):
        scale = np.sqrt(2.0 / (fan_in + fan_out))
        return np.array(scale * jax.random.normal(k, shape, jnp.float32))

    layers = []
    for lk in jax.random.split(k_layers, NUM_RNN_LAYERS):
        k1, k2 = jax.random.split(lk, 2)
        fan_in = IN_RAW * NUM_MATRICES
        # Packed weight buffer: (gate, diffusion order, [x|h|bias] row, output col).
        # gate 0 = r/u (2H outputs, bias_start 1.0), gate 1 = candidate (H outputs,
        # bias_start 0.0, columns H:2H zero pad). Bias lives in the order-0 ones row.
        w = np.zeros((2, NUM_MATRICES, IN_EXT, 2 * RNN_UNITS), np.float32)
        w[0, :, :IN_RAW, :] = xavier(k1, (NUM_MATRICES, IN_RAW, 2 * RNN_UNITS),
                                     fan_in, 2 * RNN_UNITS)
        w[1, :, :IN_RAW, :RNN_UNITS] = xavier(k2, (NUM_MATRICES, IN_RAW, RNN_UNITS),
                                              fan_in, RNN_UNITS)
        w[0, 0, IN_RAW, :] = 1.0               # r/u gate bias_start = 1.0
        w[1, 0, IN_RAW, :RNN_UNITS] = 0.0      # candidate bias_start = 0.0
        layers.append({"w": jnp.asarray(w)})
    return {"lap": lap, "layers": layers}


if __name__ == "__main__":
    key = jax.random.PRNGKey(0)
    k_params, k_in, k_seq = jax.random.split(key, 3)
    params = init_params(k_params)

    # --- single-step EncoderModel.forward (module semantics) ---
    inputs = jax.random.normal(k_in, (BATCH, NUM_NODES * INPUT_DIM), jnp.float32)
    output, hidden = encoder_forward_jit(inputs, params)
    output = jax.block_until_ready(output)
    hidden = jax.block_until_ready(hidden)
    assert output.shape == (BATCH, HIDDEN_STATE_SIZE)
    assert hidden.shape == (NUM_RNN_LAYERS, BATCH, HIDDEN_STATE_SIZE)
    assert bool(jnp.all(jnp.isfinite(output)))

    # --- fused sequence version: whole window (args.window) in one pallas_call ---
    inputs_seq = jax.random.normal(
        k_seq, (SEQ_LEN, BATCH, NUM_NODES * INPUT_DIM), jnp.float32)
    hseq = jax.block_until_ready(encoder_forward_sequence_jit(inputs_seq, params))
    assert hseq.shape == (SEQ_LEN, BATCH, HIDDEN_STATE_SIZE)
    assert bool(jnp.all(jnp.isfinite(hseq)))

    # cross-check: fused sequence kernel == stepping the single-step forward
    h_state = None
    outs = []
    for t in range(SEQ_LEN):
        out_t, h_state = encoder_forward(inputs_seq[t], params, h_state)
        outs.append(out_t)
    ref_seq = jax.block_until_ready(jnp.stack(outs))
    assert bool(jnp.allclose(hseq, ref_seq, atol=1e-4, rtol=1e-4))

    print("KERNEL_OK")
</pallas_src>

<mosaic_0001>
module attributes {stable_mosaic.version = 11 : i64} {
  func.func @dcgru_cell_kernel(%arg0: memref<32x1xf32, #tpu.memory_space<vmem>>, %arg1: memref<32x32xf32, #tpu.memory_space<vmem>>, %arg2: memref<2x32x32xf32, #tpu.memory_space<vmem>>, %arg3: memref<2x3x34x64xf32, #tpu.memory_space<vmem>>, %arg4: memref<32x32xf32, #tpu.memory_space<vmem>>) attributes {dimension_semantics = [], scalar_prefetch = 0 : i64, scratch_operands = 0 : i64, tpu.core_type = #tpu.core_type<tc>} {
    %c0 = arith.constant 0 : index
    %c0_0 = arith.constant 0 : index
    %0 = vector.load %arg0[%c0, %c0_0] : memref<32x1xf32, #tpu.memory_space<vmem>>, vector<32x1xf32>
    %c0_1 = arith.constant 0 : index
    %c0_2 = arith.constant 0 : index
    %1 = vector.load %arg1[%c0_1, %c0_2] : memref<32x32xf32, #tpu.memory_space<vmem>>, vector<32x32xf32>
    %c0_3 = arith.constant 0 : index
    %c0_4 = arith.constant 0 : index
    %c0_5 = arith.constant 0 : index
    %2 = vector.load %arg2[%c0_3, %c0_4, %c0_5] : memref<2x32x32xf32, #tpu.memory_space<vmem>>, vector<1x32x32xf32>
    %3 = vector.shape_cast %2 : vector<1x32x32xf32> to vector<32x32xf32>
    %c1 = arith.constant 1 : index
    %c0_6 = arith.constant 0 : index
    %c0_7 = arith.constant 0 : index
    %4 = vector.load %arg2[%c1, %c0_6, %c0_7] : memref<2x32x32xf32, #tpu.memory_space<vmem>>, vector<1x32x32xf32>
    %5 = vector.shape_cast %4 : vector<1x32x32xf32> to vector<32x32xf32>
    %cst = arith.constant 1.000000e+00 : f32
    %6 = vector.broadcast %cst : f32 to vector<32x1xf32>
    %7 = tpu.concatenate %0, %1, %6 in 1 : vector<32x1xf32>, vector<32x32xf32>, vector<32x1xf32> -> vector<32x34xf32>
    %cst_8 = arith.constant dense<0.000000e+00> : vector<32x34xf32>
    %8 = tpu.matmul %3, %7, %cst_8 {dimension_numbers = #tpu.dot_dimension_numbers<[1], [0], [0], [1], [0, 0, 1, 1], [], []>} : vector<32x32xf32>, vector<32x34xf32>, vector<32x34xf32> -> vector<32x34xf32>
    %cst_9 = arith.constant dense<0.000000e+00> : vector<32x34xf32>
    %9 = tpu.matmul %5, %7, %cst_9 {dimension_numbers = #tpu.dot_dimension_numbers<[1], [0], [0], [1], [0, 0, 1, 1], [], []>} : vector<32x32xf32>, vector<32x34xf32>, vector<32x34xf32> -> vector<32x34xf32>
    %c0_10 = arith.constant 0 : index
    %c0_11 = arith.constant 0 : index
    %c0_12 = arith.constant 0 : index
    %c0_13 = arith.constant 0 : index
    %10 = vector.load %arg3[%c0_10, %c0_11, %c0_12, %c0_13] : memref<2x3x34x64xf32, #tpu.memory_space<vmem>>, vector<1x1x34x64xf32>
    %11 = vector.shape_cast %10 : vector<1x1x34x64xf32> to vector<34x64xf32>
    %cst_14 = arith.constant dense<0.000000e+00> : vector<32x64xf32>
    %12 = tpu.matmul %7, %11, %cst_14 {dimension_numbers = #tpu.dot_dimension_numbers<[1], [0], [0], [1], [0, 0, 1, 1], [], []>} : vector<32x34xf32>, vector<34x64xf32>, vector<32x64xf32> -> vector<32x64xf32>
    %c0_15 = arith.constant 0 : index
    %c1_16 = arith.constant 1 : index
    %c0_17 = arith.constant 0 : index
    %c0_18 = arith.constant 0 : index
    %13 = vector.load %arg3[%c0_15, %c1_16, %c0_17, %c0_18] : memref<2x3x34x64xf32, #tpu.memory_space<vmem>>, vector<1x1x34x64xf32>
    %14 = vector.shape_cast %13 : vector<1x1x34x64xf32> to vector<34x64xf32>
    %cst_19 = arith.constant dense<0.000000e+00> : vector<32x64xf32>
    %15 = tpu.matmul %8, %14, %cst_19 {dimension_numbers = #tpu.dot_dimension_numbers<[1], [0], [0], [1], [0, 0, 1, 1], [], []>} : vector<32x34xf32>, vector<34x64xf32>, vector<32x64xf32> -> vector<32x64xf32>
    %16 = arith.addf %12, %15 : vector<32x64xf32>
    %c0_20 = arith.constant 0 : index
    %c2 = arith.constant 2 : index
    %c0_21 = arith.constant 0 : index
    %c0_22 = arith.constant 0 : index
    %17 = vector.load %arg3[%c0_20, %c2, %c0_21, %c0_22] : memref<2x3x34x64xf32, #tpu.memory_space<vmem>>, vector<1x1x34x64xf32>
    %18 = vector.shape_cast %17 : vector<1x1x34x64xf32> to vector<34x64xf32>
    %cst_23 = arith.constant dense<0.000000e+00> : vector<32x64xf32>
    %19 = tpu.matmul %9, %18, %cst_23 {dimension_numbers = #tpu.dot_dimension_numbers<[1], [0], [0], [1], [0, 0, 1, 1], [], []>} : vector<32x34xf32>, vector<34x64xf32>, vector<32x64xf32> -> vector<32x64xf32>
    %20 = arith.addf %16, %19 : vector<32x64xf32>
    %cst_24 = arith.constant 0.000000e+00 : f32
    %21 = vector.broadcast %cst_24 : f32 to vector<32x64xf32>
    %22 = arith.subf %21, %20 : vector<32x64xf32>
    %23 = math.exp %22 : vector<32x64xf32>
    %cst_25 = arith.constant 1.000000e+00 : f32
    %24 = vector.broadcast %cst_25 : f32 to vector<32x64xf32>
    %25 = arith.addf %24, %23 : vector<32x64xf32>
    %26 = tpu.reciprocal %25 {approx = true} : vector<32x64xf32> -> vector<32x64xf32>
    %27 = vector.extract_strided_slice %26 {offsets = [0, 0], sizes = [32, 32], strides = [1, 1]} : vector<32x64xf32> to vector<32x32xf32>
    %28 = vector.extract_strided_slice %26 {offsets = [0, 32], sizes = [32, 32], strides = [1, 1]} : vector<32x64xf32> to vector<32x32xf32>
    %29 = arith.mulf %27, %1 : vector<32x32xf32>
    %30 = tpu.concatenate %0, %29, %6 in 1 : vector<32x1xf32>, vector<32x32xf32>, vector<32x1xf32> -> vector<32x34xf32>
    %cst_26 = arith.constant dense<0.000000e+00> : vector<32x34xf32>
    %31 = tpu.matmul %3, %30, %cst_26 {dimension_numbers = #tpu.dot_dimension_numbers<[1], [0], [0], [1], [0, 0, 1, 1], [], []>} : vector<32x32xf32>, vector<32x34xf32>, vector<32x34xf32> -> vector<32x34xf32>
    %cst_27 = arith.constant dense<0.000000e+00> : vector<32x34xf32>
    %32 = tpu.matmul %5, %30, %cst_27 {dimension_numbers = #tpu.dot_dimension_numbers<[1], [0], [0], [1], [0, 0, 1, 1], [], []>} : vector<32x32xf32>, vector<32x34xf32>, vector<32x34xf32> -> vector<32x34xf32>
    %c1_28 = arith.constant 1 : index
    %c0_29 = arith.constant 0 : index
    %c0_30 = arith.constant 0 : index
    %c0_31 = arith.constant 0 : index
    %33 = vector.load %arg3[%c1_28, %c0_29, %c0_30, %c0_31] : memref<2x3x34x64xf32, #tpu.memory_space<vmem>>, vector<1x1x34x64xf32>
    %34 = vector.shape_cast %33 : vector<1x1x34x64xf32> to vector<34x64xf32>
    %cst_32 = arith.constant dense<0.000000e+00> : vector<32x64xf32>
    %35 = tpu.matmul %30, %34, %cst_32 {dimension_numbers = #tpu.dot_dimension_numbers<[1], [0], [0], [1], [0, 0, 1, 1], [], []>} : vector<32x34xf32>, vector<34x64xf32>, vector<32x64xf32> -> vector<32x64xf32>
    %c1_33 = arith.constant 1 : index
    %c1_34 = arith.constant 1 : index
    %c0_35 = arith.constant 0 : index
    %c0_36 = arith.constant 0 : index
    %36 = vector.load %arg3[%c1_33, %c1_34, %c0_35, %c0_36] : memref<2x3x34x64xf32, #tpu.memory_space<vmem>>, vector<1x1x34x64xf32>
    %37 = vector.shape_cast %36 : vector<1x1x34x64xf32> to vector<34x64xf32>
    %cst_37 = arith.constant dense<0.000000e+00> : vector<32x64xf32>
    %38 = tpu.matmul %31, %37, %cst_37 {dimension_numbers = #tpu.dot_dimension_numbers<[1], [0], [0], [1], [0, 0, 1, 1], [], []>} : vector<32x34xf32>, vector<34x64xf32>, vector<32x64xf32> -> vector<32x64xf32>
    %39 = arith.addf %35, %38 : vector<32x64xf32>
    %c1_38 = arith.constant 1 : index
    %c2_39 = arith.constant 2 : index
    %c0_40 = arith.constant 0 : index
    %c0_41 = arith.constant 0 : index
    %40 = vector.load %arg3[%c1_38, %c2_39, %c0_40, %c0_41] : memref<2x3x34x64xf32, #tpu.memory_space<vmem>>, vector<1x1x34x64xf32>
    %41 = vector.shape_cast %40 : vector<1x1x34x64xf32> to vector<34x64xf32>
    %cst_42 = arith.constant dense<0.000000e+00> : vector<32x64xf32>
    %42 = tpu.matmul %32, %41, %cst_42 {dimension_numbers = #tpu.dot_dimension_numbers<[1], [0], [0], [1], [0, 0, 1, 1], [], []>} : vector<32x34xf32>, vector<34x64xf32>, vector<32x64xf32> -> vector<32x64xf32>
    %43 = arith.addf %39, %42 : vector<32x64xf32>
    %44 = vector.extract_strided_slice %43 {offsets = [0, 0], sizes = [32, 32], strides = [1, 1]} : vector<32x64xf32> to vector<32x32xf32>
    %45 = math.tanh %44 : vector<32x32xf32>
    %46 = arith.subf %1, %45 : vector<32x32xf32>
    %47 = arith.mulf %28, %46 : vector<32x32xf32>
    %48 = arith.addf %45, %47 : vector<32x32xf32>
    %c0_43 = arith.constant 0 : index
    %c0_44 = arith.constant 0 : index
    %49 = vector.load %arg4[%c0_43, %c0_44] : memref<32x32xf32, #tpu.memory_space<vmem>>, vector<32x32xf32>
    tpu.vector_store %arg4[%c0_43, %c0_44], %48 {strides = array<i32>} : memref<32x32xf32, #tpu.memory_space<vmem>>, vector<32x32xf32>,
    return
  }
}

</mosaic_0001>

<bundles_post_ra>
// kernel: squeeze.1
= control target key start
LH: loop header
LB: loop body
LE: loop exit
PB: predicated region body
PF: predicated region fallthrough
CT: control target
= control target key end

     0   :  { %s38_s0 = inlined_call_operand.<no memory space> [shape: f32[], index: 0, kind: input, shape index: {}]   ;;  %s39_s1 = inlined_call_operand.vmem [shape: f32[32,32], index: 1, kind: output, shape index: {}]  }
   0x1   :  { %v2_v0 = vstv %s38_s0 }
   0x2   :  { %3 = vst [vmem:[%s39_s1] sm:$0xff] %v2_v0  ;;  %10 = vst [vmem:[%s39_s1 + $0x8] sm:$0xff] %v2_v0 }
   0x3   :  { %11 = vst [vmem:[%s39_s1 + $0x10] sm:$0xff] %v2_v0  ;;  %12 = vst [vmem:[%s39_s1 + $0x18] sm:$0xff] %v2_v0 }

// kernel: encoder_forward_jit.1
= control target key start
LH: loop header
LB: loop body
LE: loop exit
PB: predicated region body
PF: predicated region fallthrough
CT: control target
= control target key end

     0   :  { %s1610_s19 = smov 1   ;;  %vm60_vm0 = vcmask 261120   ;;  %vm50_vm1 = vcmask 7168   ;;  %vm55_vm2 = vcmask 269312   ;;  %vm279_vm3 = vcmask 1041408   ;;  %s1612_s23 = smov 96   ;;  %s1976_s1 = inlined_call_operand.vmem [shape: f32[32,32], index: 1, kind: input, shape index: {}]   ;;  %s1977_s2 = inlined_call_operand.vmem [shape: f32[2,32,32], index: 2, kind: input, shape index: {}]   ;;  %s1978_s0 = inlined_call_operand.vmem [shape: f32[32,1], index: 0, kind: input, shape index: {}]   ;;  %s1979_s3 = inlined_call_operand.vmem [shape: f32[2,3,34,64], index: 3, kind: input, shape index: {}]   ;;  %s1980_s4 = inlined_call_operand.vmem [shape: f32[32,32], index: 4, kind: output, shape index: {}]  }
   0x1   :  { %v1641_v0 = vld [vmem:[%s1976_s1 + $0x10] sm:$0xff]  ;;  %v1646_v1 = vld [vmem:[%s1976_s1] sm:$0xff]  ;;  %v1655_v2 = vld [vmem:[%s1976_s1 + $0x18] sm:$0xff]  ;;  %vm266_vm4 = vcmask 277504  }
   0x2   :  { %42 = vrot.lane.b32.xlu1 %v1641_v0, %s1610_s19  ;;  %38 = vrot.lane.b32.xlu0 %v1646_v1, %s1610_s19  ;;  %v1660_v3 = vld [vmem:[%s1976_s1 + $0x8] sm:$0xff]  ;;  %v25_v4 = vld [vmem:[%s1977_s2] sm:$0xff] }
   0x3   :  { %1343 = vmatprep.mubr.msk.f32.mxu0 %vm60_vm0, %v25_v4  ;;  %1419 = vmatprep.mubr.msk.f32.mxu1 %vm60_vm0, %v25_v4  ;;  %v1674_v6 = vld [vmem:[%s1978_s0 + $0x10] sm:$0xff]  ;;  %v1679_v8 = vld [vmem:[%s1978_s0] sm:$0xff]  ;;  %v1684_v9 = vld [vmem:[%s1978_s0 + $0x18] sm:$0xff] }
   0x4   :  { %v1689_v10 = vld [vmem:[%s1978_s0 + $0x8] sm:$0xff]  ;;  %v1723_v24 = vld [vmem:[%s1977_s2 + $0x10] sm:$0xff]  ;;  %v1738_v27 = vld [vmem:[%s1977_s2 + $0x18] sm:$0xff] }
   0x5   :  { %v1718_v23 = vld [vmem:[%s1977_s2 + $0x8] sm:$0xff]  ;;  %v1187_v26 = vld [vmem:[%s1979_s3 + $0x30] sm:$0xff]  ;;  %v1743_v28 = vld [vmem:[%s1977_s2 + $0x20] sm:$0xff] }
   0x6   :  { %44 = vrot.lane.b32.xlu1 %v1655_v2, %s1610_s19  ;;  %40 = vrot.lane.b32.xlu0 %v1660_v3, %s1610_s19  ;;  %v1186_v25 = vld [vmem:[%s1979_s3 + $0x28] sm:$0xff]  ;;  %v1188_v30 = vld [vmem:[%s1979_s3 + $0x38] sm:$0xff] }
   0x7   :  { %v1503_v29 = vpack.c.bf16 %v1187_v26, %v1186_v25  ;;  %v1189_v31 = vld [vmem:[%s1979_s3 + $0x40] sm:$0xff]  ;;  %v1758_v32 = vld [vmem:[%s1977_s2 + $0x28] sm:$0xff]  ;;  %v1763_v33 = vld [vmem:[%s1977_s2 + $0x30] sm:$0xff] }
   0x8   :  { %v1507_v34 = vpack.c.bf16 %v1189_v31, %v1188_v30  ;;  %v1772_v35 = vld [vmem:[%s1977_s2 + $0x38] sm:$0xff]  ;;  %v1190_v36 = vld [vmem:[%s1979_s3 + $0x48] sm:$0x3]  ;;  %v255_v37 = vld [vmem:[%s1979_s3] sm:$0xff] }
   0x9   :  { %v256_v38 = vld [vmem:[%s1979_s3 + $0x8] sm:$0xff]  ;;  %v257_v40 = vld [vmem:[%s1979_s3 + $0x10] sm:$0xff]  ;;  %v258_v41 = vld [vmem:[%s1979_s3 + $0x18] sm:$0xff] }
   0xa   :  { %v1511_v39 = vpack.c.bf16 %v256_v38, %v255_v37  ;;  %v1515_v44 = vpack.c.bf16 %v258_v41, %v257_v40  ;;  %v259_v47 = vld [vmem:[%s1979_s3 + $0x20] sm:$0x3]  ;;  %v1201_v48 = vld [vmem:[%s1979_s3 + $0x50] sm:$0xff]  ;;  %v1202_v49 = vld [vmem:[%s1979_s3 + $0x58] sm:$0xff] }
   0xb   :  { %v1203_v50 = vld [vmem:[%s1979_s3 + $0x60] sm:$0xff]  ;;  %v1204_v51 = vld [vmem:[%s1979_s3 + $0x68] sm:$0xff]  ;;  %v1519_v53 = vpack.c.bf16 %v1202_v49, %v1201_v48  ;;  %v1205_v58 = vld [vmem:[%s1979_s3 + $0x70] sm:$0x3] }
   0xc   :  { %v1523_v55 = vpack.c.bf16 %v1204_v51, %v1203_v50  ;;  %v1225_v50 = vld [vmem:[%s1979_s3 + $0xa8] sm:$0xff]  ;;  %v1226_v51 = vld [vmem:[%s1979_s3 + $0xb0] sm:$0xff] }
  0x74   :  { %v43_v5 = vpop.permute.xlu1 %42  ;;  %v39_v7 = vpop.permute.xlu0 %38 }
  0x75   :  { %v53_v11 = vsel %vm50_vm1, %v1674_v6, %v43_v5  ;;  %v51_v12 = vsel %vm50_vm1, %v1679_v8, %v39_v7 }
  0x76   :  { %v1700_v17 = vsel %vm55_vm2, %v53_v11, 1.0  ;;  %v1703_v18 = vsel %vm55_vm2, %v51_v12, 1.0 }
  0x78   :  { %v45_v13 = vpop.permute.xlu1 %44  ;;  %v41_v14 = vpop.permute.xlu0 %40 }
  0x79   :  { %v54_v15 = vsel %vm50_vm1, %v1684_v9, %v45_v13  ;;  %v52_v16 = vsel %vm50_vm1, %v1689_v10, %v41_v14 }
  0x7a   :  { %v1706_v19 = vsel %vm55_vm2, %v54_v15, 1.0  ;;  %v1709_v20 = vsel %vm55_vm2, %v52_v16, 1.0 }
  0x7b   :  { %v1487_v21 = vpack.c.bf16 %v1709_v20, %v1703_v18  ;;  %v1491_v22 = vpack.c.bf16 %v1706_v19, %v1700_v17 }
  0x7d   :  { %1488 = vmatprep.subr.bf16.mxu0 %v1487_v21 }
  0x7e   :  { %1490 = vmatpush3.bf16.msra.mxu0 %v1487_v21 }
  0x7f   :  { %1492 = vmatprep.subr.bf16.mxu0 %v1491_v22 }
  0x82   :  { %1494 = vmatpush3.bf16.msra.mxu0 %v1491_v22 }
  0x83   :  { %1496 = vmatprep.subr.bf16.mxu0 %v1487_v21 }
  0x85   :  { %1344 = vmatmul.mubr.msk.f32.vlgmr.msra.gmra.mrb[0].mxu0 %vm60_vm0, %v1718_v23 }
  0x86   :  { %1498 = vmatpush3.bf16.msra.mxu0 %v1487_v21  ;;  %1346 = vmatprep.mubr.msk.f32.mxu0 %vm60_vm0, %v1723_v24 }
  0x87   :  { %1500 = vmatprep.subr.bf16.mxu0 %v1491_v22 }
  0x89   :  { %1347 = vmatmul.mubr.msk.f32.gmra.mrb[2].mxu0 %vm60_vm0, %v1738_v27 }
  0x8a   :  { %1502 = vmatpush3.bf16.msra.mxu0 %v1491_v22  ;;  %1357 = vmatprep.mubr.msk.f32.mxu0 %vm60_vm0, %v1743_v28 }
  0x8b   :  { %1504 = vmatprep.subr.bf16.mxu0 %v1503_v29 }
  0x8d   :  { %1358 = vmatmul.mubr.msk.f32.vlgmr.msra.gmra.mrb[4].mxu0 %vm60_vm0, %v1758_v32 }
  0x8e   :  { %1360 = vmatprep.mubr.msk.f32.mxu0 %vm60_vm0, %v1763_v33  ;;  %1506 = vmatpush3.bf16.msra.mxu0 %v1503_v29 }
  0x8f   :  { %1508 = vmatprep.subr.bf16.mxu0 %v1507_v34 }
  0x91   :  { %1361 = vmatmul.mubr.msk.f32.gmra.mrb[6].mxu0 %vm60_vm0, %v1772_v35 }
  0x92   :  { %1510 = vmatpush3.bf16.msra.mxu0 %v1507_v34 }
  0x93   :  { %1371 = vmatprep.subr.msk.mxu0 %vm279_vm3, %v1190_v36 }
  0x96   :  { %1372 = vmatpush3.msk.msra.mxu0 %vm279_vm3, %v1190_v36 }
  0x97   :  { %1512 = vmatprep.subr.bf16.mxu0 %v1511_v39 }
 0x158   :  { %v1345_v42 = vpop.f32.mrb[0].mxu0 }
 0x159   :  { %v139_v43 = vpop.f32.mrb[1].mxu0 }
 0x15a   :  { %1373 = vmatprep.mubr.msk.f32.mxu0 %vm266_vm4, %v139_v43 }
 0x15b   :  { %1374 = vmatmul.mubr.msk.f32.vlgmr.msra.gmra.mrb[8].mxu0 %vm266_vm4, %v1345_v42 }
 0x15c   :  { %1514 = vmatpush3.bf16.msra.mxu0 %v1511_v39  ;;  %v1348_v45 = vpop.f32.mrb[2].mxu0 }
 0x15d   :  { %v149_v46 = vpop.f32.mrb[3].mxu0  ;;  %1516 = vmatprep.subr.bf16.mxu0 %v1515_v44 }
 0x15e   :  { %1376 = vmatprep.mubr.msk.f32.mxu0 %vm266_vm4, %v149_v46 }
 0x15f   :  { %1377 = vmatmul.mubr.msk.f32.gmra.mrb[10].mxu0 %vm266_vm4, %v1348_v45 }
 0x160   :  { %1518 = vmatpush3.bf16.msra.mxu0 %v1515_v44  ;;  %1389 = vmatprep.mubr.msk.f32.mxu0 %vm266_vm4, %v1703_v18  ;;  %v1359_v52 = vpop.f32.mrb[4].mxu0 }
 0x161   :  { %1387 = vmatprep.subr.msk.mxu0 %vm279_vm3, %v259_v47  ;;  %v236_v54 = vpop.f32.mrb[5].mxu0 }
 0x164   :  { %1388 = vmatpush3.msk.msra.mxu0 %vm279_vm3, %v259_v47  ;;  %v1362_v56 = vpop.f32.mrb[6].mxu0 }
 0x165   :  { %1390 = vmatmul.mubr.msk.f32.vlgmr.msra.gmra.mrb[8].mxu0 %vm266_vm4, %v1709_v20  ;;  %1520 = vmatprep.subr.bf16.mxu0 %v1519_v53  ;;  %v246_v57 = vpop.f32.mrb[7].mxu0 }
 0x166   :  { %1392 = vmatprep.mubr.msk.f32.mxu0 %vm266_vm4, %v1700_v17  ;;  %1522 = vmatpush3.bf16.msra.mxu0 %v1519_v53 }
 0x167   :  { %1524 = vmatprep.subr.bf16.mxu0 %v1523_v55 }
 0x169   :  { %1393 = vmatmul.mubr.msk.f32.gmra.mrb[10].mxu0 %vm266_vm4, %v1706_v19 }
 0x16a   :  { %1526 = vmatpush3.bf16.msra.mxu0 %v1523_v55  ;;  %1405 = vmatprep.mubr.msk.f32.mxu0 %vm266_vm4, %v236_v54 }
 0x16b   :  { %1403 = vmatprep.subr.msk.mxu0 %vm279_vm3, %v1205_v58 }
 0x16e   :  { %1404 = vmatpush3.msk.msra.mxu0 %vm279_vm3, %v1205_v58  ;;  %v1223_v58 = vld [vmem:[%s1979_s3 + $0x98] sm:$0x3] }
 0x16f   :  { %1406 = vmatmul.mubr.msk.f32.vlgmr.msra.gmra.mrb[8].mxu0 %vm266_vm4, %v1359_v52  ;;  %v1227_v52 = vld [vmem:[%s1979_s3 + $0xb8] sm:$0xff] }
 0x170   :  { %1408 = vmatprep.mubr.msk.f32.mxu0 %vm266_vm4, %v246_v57 }
 0x173   :  { %1409 = vmatmul.mubr.msk.f32.gmra.mrb[10].mxu0 %vm266_vm4, %v1362_v56 }
 0x242   :  { %v1407_v59 = vpop.f32.mrb[8].mxu0 }
 0x243   :  { %v579_v60 = vsub.f32 0.0, %v1407_v59  ;;  %v555_v61 = vpop.f32.mrb[9].mxu0  ;;  %v1239_v59 = vld [vmem:[%s1979_s3 + $0xc8] sm:$0xff] }
 0x244   :  { %v578_v62 = vsub.f32 0.0, %v555_v61  ;;  %v1241_v61 = vld [vmem:[%s1979_s3 + $0xd8] sm:$0xff] }
 0x245   :  { %v584_v63 = vmul.f32 1.442695, %v579_v60  ;;  %v1240_v60 = vld [vmem:[%s1979_s3 + $0xd0] sm:$0xff] }
 0x246   :  { %v582_v4 = vmul.f32 1.442695, %v578_v62  ;;  %v1410_v5 = vpop.f32.mrb[10].mxu0  ;;  %v1242_v62 = vld [vmem:[%s1979_s3 + $0xe0] sm:$0xff] }
 0x247   :  { %1586 = vpow2.f32 %v584_v63  ;;  %v581_v7 = vsub.f32 0.0, %v1410_v5  ;;  %v565_v11 = vpop.f32.mrb[11].mxu0 }
 0x248   :  { %1588 = vpow2.f32 %v582_v4  ;;  %v580_v12 = vsub.f32 0.0, %v565_v11  ;;  %v1559_v4 = vpack.c.bf16 %v1240_v60, %v1239_v59 }
 0x249   :  { %v588_v13 = vmul.f32 1.442695, %v581_v7  ;;  %v1563_v7 = vpack.c.bf16 %v1242_v62, %v1241_v61 }
 0x24a   :  { %v586_v14 = vmul.f32 1.442695, %v580_v12 }
 0x24b   :  { %1590 = vpow2.f32 %v588_v13  ;;  %v1243_v13 = vld [vmem:[%s1979_s3 + $0xe8] sm:$0x3] }
 0x24c   :  { %1592 = vpow2.f32 %v586_v14 }
 0x251   :  { %v1587_v15 = vpop.eup %1586 }
 0x252   :  { %v1589_v16 = vpop.eup %1588  ;;  %v591_v17 = vadd.f32 1.0, %v1587_v15 }
 0x253   :  { %v590_v18 = vadd.f32 1.0, %v1589_v16 }
 0x254   :  { %1594 = vrcp.f32 %v591_v17 }
 0x255   :  { %v1591_v19 = vpop.eup %1590  ;;  %1596 = vrcp.f32 %v590_v18 }
 0x256   :  { %v1593_v20 = vpop.eup %1592  ;;  %v593_v21 = vadd.f32 1.0, %v1591_v19 }
 0x257   :  { %v592_v22 = vadd.f32 1.0, %v1593_v20 }
 0x258   :  { %1598 = vrcp.f32 %v593_v21 }
 0x259   :  { %1600 = vrcp.f32 %v592_v22 }
 0x25e   :  { %v1831_v25 = vpop.eup %1594 }
 0x25f   :  { %v1833_v26 = vpop.eup %1596  ;;  %v599_v29 = vmul.f32 %v1831_v25, %v1660_v3 }
 0x260   :  { %v598_v30 = vmul.f32 %v1833_v26, %v1646_v1 }
 0x261   :  { %608 = vrot.lane.b32.xlu1 %v599_v29, %s1610_s19 }
 0x262   :  { %v1840_v31 = vpop.eup %1598  ;;  %606 = vrot.lane.b32.xlu0 %v598_v30, %s1610_s19 }
 0x263   :  { %v1843_v34 = vpop.eup %1600  ;;  %v601_v36 = vmul.f32 %v1840_v31, %v1655_v2 }
 0x264   :  { %v600_v37 = vmul.f32 %v1843_v34, %v1641_v0 }
 0x265   :  { %612 = vrot.lane.b32.xlu1 %v601_v36, %s1610_s19 }
 0x266   :  { %610 = vrot.lane.b32.xlu0 %v600_v37, %s1610_s19 }
 0x2d3   :  { %v609_v38 = vpop.permute.xlu1 %608 }
 0x2d4   :  { %v619_v39 = vsel %vm50_vm1, %v1689_v10, %v609_v38  ;;  %v607_v40 = vpop.permute.xlu0 %606 }
 0x2d5   :  { %v1854_v41 = vsel %vm55_vm2, %v619_v39, 1.0  ;;  %v618_v42 = vsel %vm50_vm1, %v1679_v8, %v607_v40 }
 0x2d6   :  { %v622_v43 = vsel %vm55_vm2, %v618_v42, 1.0 }
 0x2d7   :  { %v1527_v44 = vpack.c.bf16 %v1854_v41, %v622_v43  ;;  %v613_v45 = vpop.permute.xlu1 %612 }
 0x2d8   :  { %v621_v46 = vsel %vm50_vm1, %v1684_v9, %v613_v45  ;;  %v611_v47 = vpop.permute.xlu0 %610  ;;  %v1224_v9 = vld [vmem:[%s1979_s3 + $0xa0] sm:$0xff] }
 0x2d9   :  { %v1863_v48 = vsel %vm55_vm2, %v621_v46, 1.0  ;;  %v620_v10 = vsel %vm50_vm1, %v1674_v6, %v611_v47  ;;  %1528 = vmatprep.subr.bf16.mxu1 %v1527_v44  ;;  %v1543_v6 = vpack.c.bf16 %v1225_v50, %v1224_v9 }
 0x2da   :  { %v1868_v49 = vsel %vm55_vm2, %v620_v10, 1.0  ;;  %1530 = vmatpush3.bf16.msra.mxu1 %v1527_v44 }
 0x2db   :  { %v1531_v8 = vpack.c.bf16 %v1863_v48, %v1868_v49 }
 0x2dd   :  { %1532 = vmatprep.subr.bf16.mxu1 %v1531_v8 }
 0x2de   :  { %1534 = vmatpush3.bf16.msra.mxu1 %v1531_v8 }
 0x2df   :  { %1536 = vmatprep.subr.bf16.mxu1 %v1527_v44 }
 0x2e1   :  { %1420 = vmatmul.mubr.msk.f32.vlgmr.msra.gmra.mrb[0].mxu1 %vm60_vm0, %v1718_v23  ;;  %v1547_v23 = vpack.c.bf16 %v1227_v52, %v1226_v51 }
 0x2e2   :  { %1538 = vmatpush3.bf16.msra.mxu1 %v1527_v44  ;;  %1422 = vmatprep.mubr.msk.f32.mxu1 %vm60_vm0, %v1723_v24  ;;  %v1228_v24 = vld [vmem:[%s1979_s3 + $0xc0] sm:$0x3] }
 0x2e3   :  { %1540 = vmatprep.subr.bf16.mxu1 %v1531_v8 }
 0x2e5   :  { %1423 = vmatmul.mubr.msk.f32.gmra.mrb[2].mxu1 %vm60_vm0, %v1738_v27  ;;  %v1219_v27 = vld [vmem:[%s1979_s3 + $0x78] sm:$0xff] }
 0x2e6   :  { %1542 = vmatpush3.bf16.msra.mxu1 %v1531_v8  ;;  %1433 = vmatprep.mubr.msk.f32.mxu1 %vm60_vm0, %v1743_v28  ;;  %v1220_v28 = vld [vmem:[%s1979_s3 + $0x80] sm:$0xff] }
 0x2e7   :  { %1544 = vmatprep.subr.bf16.mxu1 %v1543_v6 }
 0x2e9   :  { %1434 = vmatmul.mubr.msk.f32.vlgmr.msra.gmra.mrb[4].mxu1 %vm60_vm0, %v1758_v32  ;;  %v1551_v32 = vpack.c.bf16 %v1220_v28, %v1219_v27 }
 0x2ea   :  { %1436 = vmatprep.mubr.msk.f32.mxu1 %vm60_vm0, %v1763_v33  ;;  %1546 = vmatpush3.bf16.msra.mxu1 %v1543_v6  ;;  %v1221_v33 = vld [vmem:[%s1979_s3 + $0x88] sm:$0xff] }
 0x2eb   :  { %1548 = vmatprep.subr.bf16.mxu1 %v1547_v23 }
 0x2ed   :  { %1437 = vmatmul.mubr.msk.f32.gmra.mrb[6].mxu1 %vm60_vm0, %v1772_v35  ;;  %v1222_v35 = vld [vmem:[%s1979_s3 + $0x90] sm:$0xff]  ;;  %s1611_s3 = smov 32  }
 0x2ee   :  { %1550 = vmatpush3.bf16.msra.mxu1 %v1547_v23  ;;  %v1555_v55 = vpack.c.bf16 %v1222_v35, %v1221_v33 }
 0x2ef   :  { %1447 = vmatprep.subr.msk.mxu1 %vm279_vm3, %v1228_v24 }
 0x2f2   :  { %1448 = vmatpush3.msk.msra.mxu1 %vm279_vm3, %v1228_v24 }
 0x2f3   :  { %1552 = vmatprep.subr.bf16.mxu1 %v1551_v32 }
 0x3b4   :  { %v1421_v53 = vpop.f32.mrb[0].mxu1 }
 0x3b5   :  { %v692_v54 = vpop.f32.mrb[1].mxu1 }
 0x3b6   :  { %1449 = vmatprep.mubr.msk.f32.mxu1 %vm266_vm4, %v692_v54 }
 0x3b7   :  { %1450 = vmatmul.mubr.msk.f32.vlgmr.msra.gmra.mrb[8].mxu1 %vm266_vm4, %v1421_v53 }
 0x3b8   :  { %1554 = vmatpush3.bf16.msra.mxu1 %v1551_v32  ;;  %v1424_v56 = vpop.f32.mrb[2].mxu1 }
 0x3b9   :  { %v702_v57 = vpop.f32.mrb[3].mxu1  ;;  %1556 = vmatprep.subr.bf16.mxu1 %v1555_v55 }
 0x3ba   :  { %1452 = vmatprep.mubr.msk.f32.mxu1 %vm266_vm4, %v702_v57 }
 0x3bb   :  { %1453 = vmatmul.mubr.msk.f32.gmra.mrb[10].mxu1 %vm266_vm4, %v1424_v56 }
 0x3bc   :  { %1558 = vmatpush3.bf16.msra.mxu1 %v1555_v55  ;;  %1465 = vmatprep.mubr.msk.f32.mxu1 %vm266_vm4, %v622_v43  ;;  %v1435_v63 = vpop.f32.mrb[4].mxu1 }
 0x3bd   :  { %1463 = vmatprep.subr.msk.mxu1 %vm279_vm3, %v1223_v58  ;;  %v777_v5 = vpop.f32.mrb[5].mxu1 }
 0x3c0   :  { %1464 = vmatpush3.msk.msra.mxu1 %vm279_vm3, %v1223_v58  ;;  %v1438_v11 = vpop.f32.mrb[6].mxu1 }
 0x3c1   :  { %1466 = vmatmul.mubr.msk.f32.vlgmr.msra.gmra.mrb[8].mxu1 %vm266_vm4, %v1854_v41  ;;  %1560 = vmatprep.subr.bf16.mxu1 %v1559_v4  ;;  %v787_v12 = vpop.f32.mrb[7].mxu1 }
 0x3c2   :  { %1468 = vmatprep.mubr.msk.f32.mxu1 %vm266_vm4, %v1868_v49  ;;  %1562 = vmatpush3.bf16.msra.mxu1 %v1559_v4 }
 0x3c3   :  { %1564 = vmatprep.subr.bf16.mxu1 %v1563_v7 }
 0x3c5   :  { %1469 = vmatmul.mubr.msk.f32.gmra.mrb[10].mxu1 %vm266_vm4, %v1863_v48 }
 0x3c6   :  { %1566 = vmatpush3.bf16.msra.mxu1 %v1563_v7  ;;  %1481 = vmatprep.mubr.msk.f32.mxu1 %vm266_vm4, %v777_v5 }
 0x3c7   :  { %1479 = vmatprep.subr.msk.mxu1 %vm279_vm3, %v1243_v13 }
 0x3ca   :  { %1480 = vmatpush3.msk.msra.mxu1 %vm279_vm3, %v1243_v13 }
 0x3cb   :  { %1482 = vmatmul.mubr.msk.f32.vlgmr.msra.gmra.mrb[8].mxu1 %vm266_vm4, %v1435_v63 }
 0x3cc   :  { %1484 = vmatprep.mubr.msk.f32.mxu1 %vm266_vm4, %v787_v12 }
 0x3cf   :  { %1485 = vmatmul.mubr.msk.f32.gmra.mrb[10].mxu1 %vm266_vm4, %v1438_v11 }
 0x49e   :  { %v1483_v14 = vpop.f32.mrb[8].mxu1 }
 0x49f   :  { %1602 = vtanh.f32 %v1483_v14  ;;  %v1095_v15 = vpop.f32.mrb[9].mxu1 }
 0x4a0   :  { %1604 = vtanh.f32 %v1095_v15 }
 0x4a2   :  { %v1486_v16 = vpop.f32.mrb[10].mxu1 }
 0x4a3   :  { %1606 = vtanh.f32 %v1486_v16  ;;  %v1105_v17 = vpop.f32.mrb[11].mxu1 }
 0x4a4   :  { %1608 = vtanh.f32 %v1105_v17 }
 0x4a9   :  { %v1603_v18 = vpop.eup %1602 }
 0x4aa   :  { %v1605_v19 = vpop.eup %1604  ;;  %v1123_v20 = vsub.f32 %v1660_v3, %v1603_v18 }
 0x4ab   :  { %v1122_v21 = vsub.f32 %v1646_v1, %v1605_v19 }
 0x4ac   :  { %1132 = vrot.lane.b32.xlu1 %v1123_v20, %s1611_s3 }
 0x4ad   :  { %v1607_v22 = vpop.eup %1606  ;;  %1130 = vrot.lane.b32.xlu0 %v1122_v21, %s1611_s3 }
 0x4ae   :  { %v1609_v29 = vpop.eup %1608  ;;  %v1125_v30 = vsub.f32 %v1655_v2, %v1607_v22 }
 0x4af   :  { %v1124_v36 = vsub.f32 %v1641_v0, %v1609_v29 }
 0x4b0   :  { %1136 = vrot.lane.b32.xlu1 %v1125_v30, %s1611_s3 }
 0x4b1   :  { %1134 = vrot.lane.b32.xlu0 %v1124_v36, %s1611_s3 }
 0x51e   :  { %v1133_v37 = vpop.permute.xlu1 %1132 }
 0x51f   :  { %v1143_v38 = vmul.f32 %v1831_v25, %v1133_v37  ;;  %v1131_v39 = vpop.permute.xlu0 %1130 }
 0x520   :  { %v1142_v40 = vmul.f32 %v1833_v26, %v1131_v39 }
 0x521   :  { %1152 = vrot.lane.b32.xlu1 %v1143_v38, %s1612_s23 }
 0x522   :  { %v1137_v1 = vpop.permute.xlu1 %1136  ;;  %1150 = vrot.lane.b32.xlu0 %v1142_v40, %s1612_s23 }
 0x523   :  { %v1145_v3 = vmul.f32 %v1840_v31, %v1137_v1  ;;  %v1135_v41 = vpop.permute.xlu0 %1134 }
 0x524   :  { %v1144_v42 = vmul.f32 %v1843_v34, %v1135_v41 }
 0x525   :  { %1156 = vrot.lane.b32.xlu1 %v1145_v3, %s1612_s23 }
 0x526   :  { %1154 = vrot.lane.b32.xlu0 %v1144_v42, %s1612_s23 }
 0x593   :  { %v1153_v0 = vpop.permute.xlu1 %1152 }
 0x594   :  { %v1163_v2 = vadd.f32 %v1603_v18, %v1153_v0  ;;  %v1151_v43 = vpop.permute.xlu0 %1150 }
 0x595   :  { %v1162_v44 = vadd.f32 %v1605_v19, %v1151_v43 }
 0x596   :  { %1167 = vst.msk [vmem:[%s1980_s4 + $0x8] sm:$0xff] %vm60_vm0, %v1163_v2 }
 0x597   :  { %1166 = vst.msk [vmem:[%s1980_s4] sm:$0xff] %vm60_vm0, %v1162_v44  ;;  %v1157_v25 = vpop.permute.xlu1 %1156 }
 0x598   :  { %v1165_v26 = vadd.f32 %v1607_v22, %v1157_v25  ;;  %v1155_v31 = vpop.permute.xlu0 %1154 }
 0x599   :  { %v1164_v34 = vadd.f32 %v1609_v29, %v1155_v31 }
 0x59a   :  { %1169 = vst.msk [vmem:[%s1980_s4 + $0x18] sm:$0xff] %vm60_vm0, %v1165_v26 }
 0x59b   :  { %1168 = vst.msk [vmem:[%s1980_s4 + $0x10] sm:$0xff] %vm60_vm0, %v1164_v34 }

</bundles_post_ra>
